<compile_context>
chip_gen: v7x
topology: tpu7x:2x2x1
jax: 0.10.0
libtpu: 0.0.40
codegen_flags: <defaults>
</compile_context>

<pallas_src>
import functools

import jax
import jax.numpy as jnp
from jax.experimental import pallas as pl
from jax.experimental.pallas import tpu as pltpu


def _round_up(v: int, m: int) -> int:
    return (v + m - 1) // m * m


def _cdiv(a: int, b: int) -> int:
    return (a + b - 1) // b


def _pick_vmem_limit() -> int:
    # v5e/v6e: 128 MiB VMEM -> allow ~96 MiB scoped; v7x: 64 MiB physical -> cap at 48 MiB.
    cap = 64 * 1024 * 1024
    try:
        info = pltpu.get_tpu_info()
        cap = int(getattr(info, "vmem_capacity_bytes", cap))
    except Exception:
        pass
    return int(min(96 * 1024 * 1024, max(32 * 1024 * 1024, (cap * 3) // 4)))


# ---------------------------------------------------------------------------
# Phase 1: Gram matrix (x^T x) and column sum of x, with per-core partial slots.
# Reads only x; outputs are tiny ([n_splits, Din, Din] and [n_splits, 1, Din]).
# ---------------------------------------------------------------------------
def _gram_kernel(x_ref, gram_ref, colsum_ref, *, n_valid: int, row_tile: int,
                 steps_per_core: int, needs_mask: bool):
    i = pl.program_id(1)

    @pl.when(i == 0)
    def _init():
        gram_ref[...] = jnp.zeros_like(gram_ref)
        colsum_ref[...] = jnp.zeros_like(colsum_ref)

    x = x_ref[...]
    if needs_mask:
        # Only padded tail rows ever need masking; when N is a tile multiple this is compiled out.
        tile = pl.program_id(0) * steps_per_core + i
        row = tile * row_tile + jax.lax.broadcasted_iota(jnp.int32, (row_tile, 1), 0)
        x = jnp.where(row < n_valid, x, jnp.zeros_like(x))

    # MXU: contract over the row axis -> [Din, Din] partial Gram, accumulated in f32.
    g = jax.lax.dot_general(x, x, dimension_numbers=(((0,), (0,)), ((), ())),
                            preferred_element_type=jnp.float32)
    gram_ref[...] += g[None]
    colsum_ref[...] += jnp.sum(x.astype(jnp.float32), axis=0, keepdims=True)[None]


# ---------------------------------------------------------------------------
# Phase 2: fused Linear + folded BN (scale/shift) / bias + ReLU + row-wise L2 normalize.
# ---------------------------------------------------------------------------
def _linear_bn_act_l2_kernel(x_ref, w_ref, scale_ref, shift_ref, o_ref, *,
                             apply_scale: bool, apply_shift: bool,
                             has_act: bool, has_l2norm: bool):
    h = jnp.dot(x_ref[...], w_ref[...], preferred_element_type=jnp.float32)
    if apply_scale:
        h = h * scale_ref[...]
    if apply_shift:
        h = h + shift_ref[...]
    if has_act:
        h = jnp.maximum(h, 0.0)                                  # ReLU
    if has_l2norm:
        sq = jnp.sum(h * h, axis=-1, keepdims=True)              # [tm, 1]
        # F.normalize: y / max(||y||, 1e-12)  ==  y * rsqrt(max(||y||^2, 1e-24))  (EUP rsqrt)
        h = h * jax.lax.rsqrt(jnp.maximum(sq, 1e-24))
    o_ref[...] = h.astype(o_ref.dtype)


# ---------------------------------------------------------------------------
# One GeneralLayer('linear') forward on an already-padded activation.
# ---------------------------------------------------------------------------
def _general_layer_padded(x_pad, n_valid, w, bias, gamma, beta, *, eps,
                          has_bn, has_bias, has_act, has_l2norm,
                          row_tile, n_splits, steps_per_core, vmem_limit):
    """x_pad: [N_pad, Din] (padded once by the caller); w: [Din, Dout] (torch weight transposed)."""
    n_pad, d_in = x_pad.shape
    d_out = w.shape[1]
    f32 = jnp.float32
    tm = row_tile
    n_tiles = n_pad // tm
    needs_mask = (n_pad != n_valid)

    if has_bn:
        # ---- Phase 1: batch statistics of h = x @ W via Gram/colsum of x (no h round trip). ----
        gram_p, colsum_p = pl.pallas_call(
            functools.partial(_gram_kernel, n_valid=n_valid, row_tile=tm,
                              steps_per_core=steps_per_core, needs_mask=needs_mask),
            out_shape=(
                jax.ShapeDtypeStruct((n_splits, d_in, d_in), f32),
                jax.ShapeDtypeStruct((n_splits, 1, d_in), f32),
            ),
            grid_spec=pltpu.PrefetchScalarGridSpec(
                num_scalar_prefetch=0,
                grid=(n_splits, steps_per_core),
                in_specs=[
                    pl.BlockSpec((tm, d_in), lambda c, i: (c * steps_per_core + i, 0)),
                ],
                out_specs=[
                    pl.BlockSpec((1, d_in, d_in), lambda c, i: (c, 0, 0)),  # per-core slot
                    pl.BlockSpec((1, 1, d_in), lambda c, i: (c, 0, 0)),     # per-core slot
                ],
            ),
            compiler_params=pltpu.CompilerParams(
                dimension_semantics=("parallel", "arbitrary"),   # v7x: both TCs split the stream
                vmem_limit_bytes=vmem_limit,
            ),
        )(x_pad)

        # Tiny [Din,Din]@[Din,Dout] work: fine in plain JAX.
        w32 = w.astype(f32)
        gram = jnp.sum(gram_p, axis=0)                                    # [Din, Din]
        colsum = jnp.sum(colsum_p, axis=0)                                # [1, Din]
        ssum = colsum @ w32                                               # sum_n h_{n,c}
        ssq = jnp.sum((gram @ w32) * w32, axis=0, keepdims=True)          # sum_n h_{n,c}^2
        inv_n = 1.0 / n_valid
        mean = ssum * inv_n
        # TODO(synk): E[h^2]-mean^2 can cancel on strongly off-centered data; switch to a
        #             shifted / two-pass variance if tighter accuracy is ever required.
        var = jnp.maximum(ssq * inv_n - mean * mean, 0.0)                 # biased variance
        inv_std = jax.lax.rsqrt(var + eps)
        scale = gamma.reshape(1, d_out).astype(f32) * inv_std
        shift = beta.reshape(1, d_out).astype(f32) - mean * scale
        apply_scale, apply_shift = True, True
    elif has_bias:
        scale = jnp.ones((1, d_out), f32)                                 # unused in kernel
        shift = bias.reshape(1, d_out).astype(f32)
        apply_scale, apply_shift = False, True
    else:
        scale = jnp.ones((1, d_out), f32)
        shift = jnp.zeros((1, d_out), f32)
        apply_scale, apply_shift = False, False

    # ---- Phase 2: fused matmul + scale/shift + ReLU + L2, fully parallel over row tiles. ----
    # Full weight block kept resident (Din/Dout are small); add a K grid axis only if dims grow.
    y = pl.pallas_call(
        functools.partial(_linear_bn_act_l2_kernel, apply_scale=apply_scale,
                          apply_shift=apply_shift, has_act=has_act,
                          has_l2norm=has_l2norm),
        out_shape=jax.ShapeDtypeStruct((n_pad, d_out), x_pad.dtype),
        grid_spec=pltpu.PrefetchScalarGridSpec(
            num_scalar_prefetch=0,
            grid=(n_tiles,),
            in_specs=[
                pl.BlockSpec((tm, d_in), lambda i: (i, 0)),      # x row tile
                pl.BlockSpec((d_in, d_out), lambda i: (0, 0)),   # full weight, DMA'd once
                pl.BlockSpec((1, d_out), lambda i: (0, 0)),      # folded BN scale
                pl.BlockSpec((1, d_out), lambda i: (0, 0)),      # folded BN shift / bias
            ],
            out_specs=pl.BlockSpec((tm, d_out), lambda i: (i, 0)),
        ),
        compiler_params=pltpu.CompilerParams(
            dimension_semantics=("parallel",),                   # megacore-friendly
            vmem_limit_bytes=vmem_limit,
        ),
    )(x_pad, w, scale, shift)
    return y


# ---------------------------------------------------------------------------
# GeneralMultiLayer forward: pad once, run layers, slice once.
# ---------------------------------------------------------------------------
def general_multi_layer_forward(x, layer_params, *, eps=1e-5, has_bn=True,
                                has_l2norm=True, final_act=True,
                                row_tile=1024, compute_dtype=None):
    """layer_params: list of (w [Din,Dout], bias [Dout], gamma [Dout], beta [Dout])."""
    n = x.shape[0]
    compute_dtype = compute_dtype or x.dtype     # pass jnp.bfloat16 to halve activation traffic

    tm = min(row_tile, _round_up(n, 8))
    n_tiles = _cdiv(n, tm)
    n_splits = 2 if n_tiles >= 2 else 1          # v7x: 2 TensorCores share the stats reduction
    steps_per_core = _cdiv(n_tiles, n_splits)
    n_pad = n_splits * steps_per_core * tm
    vmem_limit = _pick_vmem_limit()

    xp = x.astype(compute_dtype)
    if n_pad != n:
        xp = jnp.pad(xp, ((0, n_pad - n), (0, 0)))   # once, before layer 0

    n_layers = len(layer_params)
    for li, (w, bias, gamma, beta) in enumerate(layer_params):
        has_act = True if li < n_layers - 1 else final_act
        xp = _general_layer_padded(
            xp, n, w.astype(compute_dtype), bias, gamma, beta,
            eps=eps, has_bn=has_bn, has_bias=not has_bn, has_act=has_act,
            has_l2norm=has_l2norm, row_tile=tm, n_splits=n_splits,
            steps_per_core=steps_per_core, vmem_limit=vmem_limit)

    return xp[:n] if n_pad != n else xp              # once, after the last layer


if __name__ == "__main__":
    # GeneralMultiLayer('linear', LayerConfig(num_layers=2, dim_in=64, dim_out=128,
    #   dim_inner=None -> 128, has_batchnorm=True, bn_eps=1e-5, has_l2norm=True,
    #   dropout=0.0, act='relu', final_act=True))
    num_nodes = 1000                # not a tile multiple -> exercises the validity-mask path
    dim_in, dim_inner, dim_out = 64, 128, 128
    num_layers = 2
    eps = 1e-5
    row_tile = 256                  # small tile so the demo grid has several steps and both
                                    # core slots are used; default 1024 is better for large N

    key = jax.random.PRNGKey(0)
    kx, kw = jax.random.split(key)
    x = jax.random.normal(kx, (num_nodes, dim_in), dtype=jnp.float32)

    # Per-layer dims, mirroring GeneralMultiLayer.__init__.
    layer_dims = []
    for i in range(num_layers):
        d_i = dim_in if i == 0 else dim_inner
        d_o = dim_out if i == num_layers - 1 else dim_inner
        layer_dims.append((d_i, d_o))

    wkeys = jax.random.split(kw, num_layers)
    layer_params = []
    for (d_i, d_o), wk in zip(layer_dims, wkeys):
        w = jax.random.normal(wk, (d_i, d_o), dtype=jnp.float32) / jnp.sqrt(float(d_i))
        bias = jnp.zeros((d_o,), jnp.float32)    # has_batchnorm=True -> Linear(bias=False)
        gamma = jnp.ones((d_o,), jnp.float32)    # BatchNorm1d default affine init
        beta = jnp.zeros((d_o,), jnp.float32)
        layer_params.append((w, bias, gamma, beta))

    out = general_multi_layer_forward(x, layer_params, eps=eps, has_bn=True,
                                      has_l2norm=True, final_act=True,
                                      row_tile=row_tile)
    out = jax.block_until_ready(out)

    # Pure-JAX reference: Linear -> training-mode BatchNorm1d -> ReLU -> F.normalize(p=2, dim=1).
    def ref_forward(x_ref):
        h_in = x_ref
        for (w, bias, gamma, beta) in layer_params:
            h = h_in @ w
            mean = jnp.mean(h, axis=0, keepdims=True)
            var = jnp.mean((h - mean) ** 2, axis=0, keepdims=True)   # biased variance
            h = (h - mean) / jnp.sqrt(var + eps) * gamma[None, :] + beta[None, :]
            h = jnp.maximum(h, 0.0)
            nrm = jnp.sqrt(jnp.sum(h * h, axis=1, keepdims=True))
            h_in = h / jnp.maximum(nrm, 1e-12)
        return h_in

    ref = ref_forward(x)
    assert out.shape == ref.shape
    max_err = float(jnp.max(jnp.abs(out - ref)))
    assert jnp.allclose(out, ref, atol=1e-4, rtol=1e-4), f"mismatch vs reference, max abs err={max_err}"
    print("KERNEL_OK")
</pallas_src>

<mosaic_0001>
module attributes {stable_mosaic.version = 11 : i64} {
  func.func @_gram_kernel(%arg0: i32, %arg1: i32, %arg2: memref<256x64xf32, #tpu.memory_space<vmem>>, %arg3: memref<1x64x64xf32, #tpu.memory_space<vmem>>, %arg4: memref<1x1x64xf32, #tpu.memory_space<vmem>>) attributes {dimension_semantics = [#tpu.dimension_semantics<parallel>, #tpu.dimension_semantics<arbitrary>], iteration_bounds = array<i64: 2, 2>, scalar_prefetch = 0 : i64, scratch_operands = 0 : i64, tpu.core_type = #tpu.core_type<tc>, window_params = [{transform_indices = @transform_0, window_bounds = array<i64: 256, 64>}, {transform_indices = @transform_1, window_bounds = array<i64: 1, 64, 64>}, {transform_indices = @transform_2, window_bounds = array<i64: 1, 1, 64>}]} {
    %c0_i32 = arith.constant 0 : i32
    %0 = arith.cmpi eq, %arg1, %c0_i32 : i32
    %1 = arith.extui %0 : i1 to i32
    %c0_i32_0 = arith.constant 0 : i32
    %2 = arith.cmpi ne, %1, %c0_i32_0 : i32
    scf.if %2 {
      %cst_16 = arith.constant 0.000000e+00 : f32
      %27 = vector.broadcast %cst_16 : f32 to vector<1x64x64xf32>
      %c0_17 = arith.constant 0 : index
      %c0_18 = arith.constant 0 : index
      %c0_19 = arith.constant 0 : index
      %28 = vector.load %arg3[%c0_17, %c0_18, %c0_19] : memref<1x64x64xf32, #tpu.memory_space<vmem>>, vector<1x64x64xf32>
      tpu.vector_store %arg3[%c0_17, %c0_18, %c0_19], %27 {strides = array<i32>} : memref<1x64x64xf32, #tpu.memory_space<vmem>>, vector<1x64x64xf32>,
      %cst_20 = arith.constant 0.000000e+00 : f32
      %29 = vector.broadcast %cst_20 : f32 to vector<1x1x64xf32>
      %c0_21 = arith.constant 0 : index
      %c0_22 = arith.constant 0 : index
      %c0_23 = arith.constant 0 : index
      %30 = vector.load %arg4[%c0_21, %c0_22, %c0_23] : memref<1x1x64xf32, #tpu.memory_space<vmem>>, vector<1x1x64xf32>
      tpu.vector_store %arg4[%c0_21, %c0_22, %c0_23], %29 {strides = array<i32>} : memref<1x1x64xf32, #tpu.memory_space<vmem>>, vector<1x1x64xf32>,
    } else {
    }
    %c0 = arith.constant 0 : index
    %c0_1 = arith.constant 0 : index
    %3 = vector.load %arg2[%c0, %c0_1] : memref<256x64xf32, #tpu.memory_space<vmem>>, vector<256x64xf32>
    %c2_i32 = arith.constant 2 : i32
    %4 = arith.muli %arg0, %c2_i32 : i32
    %5 = arith.addi %4, %arg1 : i32
    %c256_i32 = arith.constant 256 : i32
    %6 = arith.muli %5, %c256_i32 : i32
    %7 = tpu.iota {dimensions = array<i32: 0>} : vector<256x1xi32>
    %8 = vector.broadcast %6 : i32 to vector<256x1xi32>
    %9 = arith.addi %8, %7 : vector<256x1xi32>
    %c1000_i32 = arith.constant 1000 : i32
    %10 = vector.broadcast %c1000_i32 : i32 to vector<256x1xi32>
    %11 = arith.cmpi slt, %9, %10 : vector<256x1xi32>
    %cst = arith.constant 0.000000e+00 : f32
    %12 = vector.broadcast %cst : f32 to vector<256x64xf32>
    %13 = vector.shape_cast %11 : vector<256x1xi1> to vector<256x1xi1>
    %14 = vector.broadcast %13 : vector<256x1xi1> to vector<256x64xi1>
    %15 = arith.select %14, %3, %12 : vector<256x64xi1>, vector<256x64xf32>
    %cst_2 = arith.constant dense<0.000000e+00> : vector<64x64xf32>
    %16 = tpu.matmul %15, %15, %cst_2 {dimension_numbers = #tpu.dot_dimension_numbers<[0], [0], [1], [1], [0, 1, 1, 1], [], []>} : vector<256x64xf32>, vector<256x64xf32>, vector<64x64xf32> -> vector<64x64xf32>
    %c0_3 = arith.constant 0 : index
    %c0_4 = arith.constant 0 : index
    %c0_5 = arith.constant 0 : index
    %17 = vector.load %arg3[%c0_3, %c0_4, %c0_5] : memref<1x64x64xf32, #tpu.memory_space<vmem>>, vector<1x64x64xf32>
    %18 = vector.shape_cast %16 : vector<64x64xf32> to vector<1x64x64xf32>
    %19 = arith.addf %17, %18 : vector<1x64x64xf32>
    %c0_6 = arith.constant 0 : index
    %c0_7 = arith.constant 0 : index
    %c0_8 = arith.constant 0 : index
    %20 = vector.load %arg3[%c0_6, %c0_7, %c0_8] : memref<1x64x64xf32, #tpu.memory_space<vmem>>, vector<1x64x64xf32>
    tpu.vector_store %arg3[%c0_6, %c0_7, %c0_8], %19 {strides = array<i32>} : memref<1x64x64xf32, #tpu.memory_space<vmem>>, vector<1x64x64xf32>,
    %c0_9 = arith.constant 0 : index
    %c0_10 = arith.constant 0 : index
    %c0_11 = arith.constant 0 : index
    %21 = vector.load %arg4[%c0_9, %c0_10, %c0_11] : memref<1x1x64xf32, #tpu.memory_space<vmem>>, vector<1x1x64xf32>
    %cst_12 = arith.constant dense<0.000000e+00> : vector<64xf32>
    %22 = vector.multi_reduction <add>, %15, %cst_12 [0] : vector<256x64xf32> to vector<64xf32>
    %23 = vector.shape_cast %22 : vector<64xf32> to vector<1x64xf32>
    %24 = vector.shape_cast %23 : vector<1x64xf32> to vector<1x1x64xf32>
    %25 = arith.addf %21, %24 : vector<1x1x64xf32>
    %c0_13 = arith.constant 0 : index
    %c0_14 = arith.constant 0 : index
    %c0_15 = arith.constant 0 : index
    %26 = vector.load %arg4[%c0_13, %c0_14, %c0_15] : memref<1x1x64xf32, #tpu.memory_space<vmem>>, vector<1x1x64xf32>
    tpu.vector_store %arg4[%c0_13, %c0_14, %c0_15], %25 {strides = array<i32>} : memref<1x1x64xf32, #tpu.memory_space<vmem>>, vector<1x1x64xf32>,
    return
  }
  func.func @transform_0(%arg0: i32, %arg1: i32) -> (i32, i32) {
    %c2_i32 = arith.constant 2 : i32
    %0 = arith.muli %arg0, %c2_i32 : i32
    %1 = arith.addi %0, %arg1 : i32
    %c0_i32 = arith.constant 0 : i32
    %c0_i32_0 = arith.constant 0 : i32
    return %1, %c0_i32 : i32, i32
  }
  func.func @transform_1(%arg0: i32, %arg1: i32) -> (i32, i32, i32) {
    %c0_i32 = arith.constant 0 : i32
    %c0_i32_0 = arith.constant 0 : i32
    %c0_i32_1 = arith.constant 0 : i32
    return %arg0, %c0_i32, %c0_i32_0 : i32, i32, i32
  }
  func.func @transform_2(%arg0: i32, %arg1: i32) -> (i32, i32, i32) {
    %c0_i32 = arith.constant 0 : i32
    %c0_i32_0 = arith.constant 0 : i32
    %c0_i32_1 = arith.constant 0 : i32
    return %arg0, %c0_i32, %c0_i32_0 : i32, i32, i32
  }
}

</mosaic_0001>

<bundles_post_ra>
// kernel: tpu_custom_call.1
= control target key start
LH: loop header
LB: loop body
LE: loop exit
PB: predicated region body
PF: predicated region fallthrough
CT: control target
= control target key end

     0   :  { %8 = vsyncpa [#allocation3], 0  ;;  %s1776_s0 = inlined_call_operand.vmem [shape: f32[1024,64], index: 0, kind: input, shape index: {}]   ;;  %s1777_s1 = inlined_call_operand.hbm [shape: f32[2,64,64], index: 1, kind: output, shape index: {0}]   ;;  %s1778_s2 = inlined_call_operand.hbm [shape: f32[2,1,64], index: 2, kind: output, shape index: {1}]  }
   0x1   :  { %10 = vsyncpa [#allocation3 + $0x1], 0 }
   0x2   :  { %11 = vsyncpa [#allocation5], 0 }
   0x3   :  { %13 = vsyncpa [#allocation5 + $0x1], 0  ;;  %s1295_s9 = smov 0   ;;  %s1297_s10 = smov 0  }
   0x4   :  { %s1299_s11 = smov 0   ;;  %s1301_s12 = smov 0  }
   0x5   :  { %s1303_s13 = smov 0   ;;  %s1305_s14 = smov 0  }
   0x6   :  { %s1307_s15 = smov 0   ;;  %s1309_s16 = smov 0  }
   0x7 LB: > { %s823_s17 = sadd.s32 4294967295, %s1273_s16   ;;  %s824_s18 = sadd.s32 4294967294, %s1273_s16   ;;  %s1273_s16 = sphi %s1309_s16, %s19_s16   ;;  %s1269_s15 = sphi %s1307_s15, %s1795_s15   ;;  %s1265_s14 = sphi %s1305_s14, %s1794_s14   ;;  %s1261_s13 = sphi %s1303_s13, %s1793_s13   ;;  %s1257_s12 = sphi %s1301_s12, %s1792_s12   ;;  %s1253_s11 = sphi %s1299_s11, %s1791_s11   ;;  %s1249_s10 = sphi %s1297_s10, %s1790_s10   ;;  %s1245_s9 = sphi %s1295_s9, %s1789_s9  }
   0x8   : > { %s28_s19 = sadd.s32 1, %s1265_s14  ;;  %s31_s20 = sadd.s32 1, %s1269_s15 }
   0x9   : > { %p29_p0 = scmp.ge.s32.totalorder %s28_s19, 2  ;;  %p78_p1 = scmp.ne.s32.totalorder %s1253_s11, %s1249_s10 }
   0xa   : > { %p79_p2 = scmp.eq.s32.totalorder %s823_s17, 3  ;;  %p84_p4 = scmp.ne.s32.totalorder %s1249_s10, %s1245_s9 }
   0xb   : > { %s1797_s19 = smov (%p29_p0, %s28_s19), 0  ;;  %s1799_s20 = smov (!%p29_p0, %s31_s20), %s1269_s15 }
   0xc   : > { %p1344_p3 = por %p79_p2, %p78_p1  ;;  %p33_p5 = scmp.ge.s32.totalorder %s1799_s20, 2 }
   0xd   : > { %p85_p6 = scmp.eq.s32.totalorder %s824_s18, 3  ;;  %p829_p7 = scmp.ge.s32.totalorder %s1273_s16, 1 }
   0xe   : > { %p142_p8 = scmp.lt.s32.totalorder %s1273_s16, 5  ;;  %s1801_s20 = smov (%p33_p5, %s1799_s20), 0 }
   0xf   : > { %p1354_p9 = por %p85_p6, %p84_p4  ;;  %s65_s23 = ssub.s32 %s1269_s15, %s1801_s20 }
  0x10   : > { %p143_p10 = pnand %p829_p7, %p142_p8  ;;  %s68_s24 = sadd.s32 1, %s1253_s11 }
  0x11   : > { %p66_p11 = scmp.eq.s32.totalorder %s65_s23, 0  ;;  %s1365_s26 = sand.u32 (!%p143_p10), 1, %s1249_s10  }
  0x12   : > { %146 = sbr.rel (%p143_p10) target bundleno = 436 (0x1b4), region = 24  ;;  %s831_s27 = sshll.u32 (!%p143_p10), %s1261_s13, 1 }
  0x13   : > { %s1362_s25 = scalar_select %p66_p11, %s1253_s11, %s68_s24  }
  0x14   : > { %s830_s28 = sshll.u32 (!%p143_p10), %s1365_s26, 6  ;;  %s171_s29 = sadd.s32 (!%p143_p10), %s1257_s12, %s831_s27 }
  0x15   : > { %s832_s30 = sshll.u32 (!%p143_p10), %s171_s29, 5  ;;  %s1375_s7 = scalar_lea.vmem (!%p143_p10), [#allocation2], %s830_s28 }
  0x16   : > { %p173_p12 = scmp.lt.s32.totalorder (!%p143_p10), %s832_s30, 127  ;;  %s1378_s8 = scalar_lea.vmem (!%p143_p10), [#allocation4], %s1365_s26 }
  0x17   : > { %p834_p13 = scmp.ne.s32.totalorder (!%p143_p10), %s1257_s12, 0 }
  0x19   : > { %s1803_s30 = smov (!%p173_p12, %s832_s30), 127  ;;  %183 = sbr.rel (%p834_p13) target bundleno = 32 (0x20), region = 28 }
  0x1a   : > { %s833_s3 = sshll.u32 %s1803_s30, 3  ;;  %vm184_vm0 = vcmask (!%p834_p13), 523264   ;;  %vm193_vm1 = vcmask (!%p834_p13), 516096   ;;  %v1275_v0 = vmov (!%p834_p13), 0.0  }
  0x1b   : > { %s1373_s6 = scalar_lea.vmem %s1776_s0, %s833_s3  ;;  %185 = vst.msk [vmem:[%s1375_s7] sm:$0xff] (!%p834_p13), %vm184_vm0, %v1275_v0  ;;  %186 = vst.msk [vmem:[%s1375_s7 + $0x8] sm:$0xff] (!%p834_p13), %vm184_vm0, %v1275_v0 }
  0x1c   : > { %187 = vst.msk [vmem:[%s1375_s7 + $0x10] sm:$0xff] (!%p834_p13), %vm184_vm0, %v1275_v0  ;;  %188 = vst.msk [vmem:[%s1375_s7 + $0x18] sm:$0xff] (!%p834_p13), %vm184_vm0, %v1275_v0 }
  0x1d   : > { %189 = vst.msk [vmem:[%s1375_s7 + $0x20] sm:$0xff] (!%p834_p13), %vm184_vm0, %v1275_v0  ;;  %190 = vst.msk [vmem:[%s1375_s7 + $0x28] sm:$0xff] (!%p834_p13), %vm184_vm0, %v1275_v0 }
  0x1e   : > { %191 = vst.msk [vmem:[%s1375_s7 + $0x30] sm:$0xff] (!%p834_p13), %vm184_vm0, %v1275_v0  ;;  %192 = vst.msk [vmem:[%s1375_s7 + $0x38] sm:$0xff] (!%p834_p13), %vm184_vm0, %v1275_v0 }
  0x1f   : > { %194 = vst.msk [vmem:[%s1378_s8] sm:$0x1] (!%p834_p13), %vm193_vm1, %v1275_v0 }
  0x20 PF: > { %s836_s12 = sshll.u32 %s171_s29, 8  ;;  %v230_v1 = vlaneseq  ;;  %v195_v2 = vld [vmem:[%s1373_s6] sm:$0xff]  ;;  %v196_v3 = vld [vmem:[%s1373_s6 + $0x8] sm:$0xff]  ;;  %v213_v8 = vld [vmem:[%s1373_s6 + $0x90] sm:$0xff]  ;;  %vm609_vm2 = vcmask 523264   ;;  %s872_s17 = sshll.u32 %s1261_s13, 4 }
  0x21   : > { %v211_v4 = vld [vmem:[%s1373_s6 + $0x80] sm:$0xff]  ;;  %v1393_v5 = vstv %s836_s12  ;;  %v212_v7 = vld [vmem:[%s1373_s6 + $0x88] sm:$0xff]  ;;  %v214_v9 = vld [vmem:[%s1373_s6 + $0x98] sm:$0xff]  ;;  %v935_v10 = vpack.c.bf16 %v196_v3, %v195_v2  ;;  %s725_s18 = sshll.u32 %s1378_s8, 4  ;;  %s1671_s27 = scalar_lea.hbm %s1778_s2, %s872_s17  ;;  %s726_s18 = int_to_ptr.vmem [resolvable:$true] %s725_s18 }
  0x22   : > { %v1395_v6 = vshrl.u32 %v230_v1, 7  ;;  %v938_v11 = vpack.c.bf16 %v214_v9, %v213_v8  ;;  %v932_v12 = vpack.c.bf16 %v212_v7, %v211_v4  ;;  %v197_v29 = vld [vmem:[%s1373_s6 + $0x10] sm:$0xff]  ;;  %v198_v33 = vld [vmem:[%s1373_s6 + $0x18] sm:$0xff]  ;;  %v215_v50 = vld [vmem:[%s1373_s6 + $0xa0] sm:$0xff]  ;;  %s697_s28 = scalar_lea.sflag [#allocation5], %s1365_s26  ;;  %s1147_s29 = scalar_lea.vmem %s726_s18, 16 }
  0x23   : > { %v941_v36 = vpack.c.bf16 %v198_v33, %v197_v29  ;;  %v216_v52 = vld [vmem:[%s1373_s6 + $0xa8] sm:$0xff]  ;;  %v199_v55 = vld [vmem:[%s1373_s6 + $0x20] sm:$0xff]  ;;  %p1148_p0 = scmp.ne.s32.totalorder %s726_s18, %s1147_s29  ;;  %s1276_s30 = smov [#allocation4]  }
  0x24   : > { %v247_v13 = vadd.s32 128, %v1395_v6  ;;  %v264_v14 = vadd.s32 %v1393_v5, %v1395_v6  ;;  %v232_v15 = vadd.s32 8, %v1395_v6  ;;  %v248_v16 = vadd.s32 136, %v1395_v6  ;;  %v200_v57 = vld [vmem:[%s1373_s6 + $0x28] sm:$0xff]  ;;  %v219_v44 = vld [vmem:[%s1373_s6 + $0xc0] sm:$0xff]  ;;  %s1151_s3 = sshll.u32 %s1276_s30, 4  ;;  %s1152_s3 = int_to_ptr.vmem [resolvable:$false] %s1151_s3 }
  0x25   : > { %v233_v17 = vadd.s32 16, %v1395_v6  ;;  %v249_v18 = vadd.s32 144, %v1395_v6  ;;  %v234_v19 = vadd.s32 24, %v1395_v6  ;;  %v250_v20 = vadd.s32 152, %v1395_v6  ;;  %p1149_p1 = pnand %p1148_p0, %p1344_p3  ;;  %s1153_s4 = scalar_lea.vmem %s1152_s3, 32 }
  0x26   : > { %v280_v21 = vadd.s32 %v1393_v5, %v247_v13  ;;  %vm296_vm3 = vcmp.lt.s32.totalorder %v264_v14, 1000  ;;  %v265_v22 = vadd.s32 %v1393_v5, %v232_v15  ;;  %v281_v23 = vadd.s32 %v1393_v5, %v248_v16  ;;  %v201_v13 = vld [vmem:[%s1373_s6 + $0x30] sm:$0xff]  ;;  %p1154_p4 = scmp.lt.s32.totalorder %s726_s18, %s1152_s3  ;;  %p1155_p5 = scmp.lt.s32.totalorder %s1153_s4, %s1147_s29 }
  0x27   : > { %v392_v24 = vsel %vm296_vm3, %v195_v2, 0.0  ;;  %v266_v25 = vadd.s32 %v1393_v5, %v233_v17  ;;  %v282_v26 = vadd.s32 %v1393_v5, %v249_v18  ;;  %v267_v27 = vadd.s32 %v1393_v5, %v234_v19  ;;  %v202_v17 = vld [vmem:[%s1373_s6 + $0x38] sm:$0xff]  ;;  %p1150_p2 = pneg %p1149_p1 }
  0x28   : > { %vm312_vm4 = vcmp.lt.s32.totalorder %v280_v21, 1000  ;;  %v619_v28 = vsel %vm609_vm2, %v392_v24, 0.0  ;;  %vm297_vm5 = vcmp.lt.s32.totalorder %v265_v22, 1000  ;;  %vm313_vm6 = vcmp.lt.s32.totalorder %v281_v23, 1000  ;;  %v217_v22 = vld [vmem:[%s1373_s6 + $0xb0] sm:$0xff]  ;;  %p1156_p6 = por %p1155_p5, %p1154_p4 }
  0x29   : > { %v1418_v30 = vsel %vm312_vm4, %v211_v4, 0.0  ;;  %v393_v31 = vsel %vm297_vm5, %v196_v3, 0.0  ;;  %v1421_v32 = vsel %vm313_vm6, %v212_v7, 0.0  ;;  %vm298_vm7 = vcmp.lt.s32.totalorder %v266_v25, 1000  ;;  %vm933_vm8 = vmpackc.low %vm313_vm6, %vm312_vm4 }
  0x2a   : > { %v1075_v34 = vpack.i.bf16 %v392_v24, %v1418_v30  ;;  %v1077_v35 = vpack.i.bf16 %v393_v31, %v1421_v32  ;;  %934 = vmatprep.subr.msk.bf16.mxu0 %vm933_vm8, %v932_v12  ;;  %980 = vmatprep.subr.msk.bf16.mxu1 %vm933_vm8, %v932_v12  ;;  %v620_v37 = vsel %vm609_vm2, %v393_v31, 0.0  ;;  %vm314_vm9 = vcmp.lt.s32.totalorder %v282_v26, 1000  ;;  %vm936_vm10 = vmpackc.low %vm297_vm5, %vm296_vm3  ;;  %v218_v24 = vld [vmem:[%s1373_s6 + $0xb8] sm:$0xff]  ;;  %p1157_p7 = pnand %p1156_p6, %p1150_p2 }
  0x2b   : > { %v394_v38 = vsel %vm298_vm7, %v197_v29, 0.0  ;;  %v283_v39 = vadd.s32 %v1393_v5, %v250_v20  ;;  %v621_v40 = vadd.f32 %v620_v37, %v619_v28  ;;  %v1432_v41 = vsel %vm314_vm9, %v213_v8, 0.0  ;;  %937 = vmatpush3.bf16.msk.msra.mxu0 %vm936_vm10, %v935_v10  ;;  %988 = vmatpush3.bf16.msk.msra.mxu1 %vm936_vm10, %v935_v10 }
  0x2c   : > { %1076 = vxpose.xlu0.b32.start [1/16] (narrow) %v1075_v34, 64  ;;  %v622_v42 = vsel %vm609_vm2, %v394_v38, 0.0  ;;  %vm299_vm11 = vcmp.lt.s32.totalorder %v267_v27, 1000  ;;  %v235_v47 = vadd.s32 32, %v1395_v6  ;;  %v1079_v48 = vpack.i.bf16 %v394_v38, %v1432_v41 }
  0x2d   : > { %vm315_vm12 = vcmp.lt.s32.totalorder %v283_v39, 1000  ;;  %v395_v43 = vsel %vm299_vm11, %v198_v33, 0.0  ;;  %vm1436_vm13 = vmpackc.low %vm299_vm11, %vm298_vm7  ;;  %v623_v45 = vadd.f32 %v622_v42, %v621_v40  ;;  %v251_v51 = vadd.s32 160, %v1395_v6  ;;  %v203_v39 = vld [vmem:[%s1373_s6 + $0x40] sm:$0xff] }
  0x2e   : > { %v624_v46 = vsel %vm609_vm2, %v395_v43, 0.0  ;;  %vm939_vm14 = vmpackc.low %vm315_vm12, %vm314_vm9  ;;  %v1444_v49 = vsel %vm315_vm12, %v214_v9, 0.0  ;;  %v236_v53 = vadd.s32 40, %v1395_v6  ;;  %v268_v56 = vadd.s32 %v1393_v5, %v235_v47  ;;  %v204_v47 = vld [vmem:[%s1373_s6 + $0x48] sm:$0xff] }
  0x2f   : > { %940 = vmatprep.subr.msk.bf16.mxu0 %vm939_vm14, %v938_v11  ;;  %981 = vmatprep.subr.msk.bf16.mxu1 %vm939_vm14, %v938_v11  ;;  %v625_v54 = vadd.f32 %v624_v46, %v623_v45  ;;  %v252_v58 = vadd.s32 168, %v1395_v6  ;;  %v944_v59 = vpack.c.bf16 %v216_v52, %v215_v50  ;;  %v284_v60 = vadd.s32 %v1393_v5, %v251_v51 }
  0x30   : > { %1078 = vxpose.xlu0.b32.cont [2/16] (narrow) %v1077_v35, 64  ;;  %943 = vmatpush3.bf16.msk.msra.mxu0 %vm1436_vm13, %v941_v36  ;;  %v269_v61 = vadd.s32 %v1393_v5, %v236_v53  ;;  %v947_v62 = vpack.c.bf16 %v200_v57, %v199_v55  ;;  %v237_v63 = vadd.s32 48, %v1395_v6  ;;  %vm300_vm15 = vcmp.lt.s32.totalorder %v268_v56, 1000 }
  0x31   : > { %989 = vmatpush3.bf16.msk.msra.mxu1 %vm1436_vm13, %v941_v36  ;;  %v285_v0 = vadd.s32 %v1393_v5, %v252_v58  ;;  %v253_v1 = vadd.s32 176, %v1395_v6  ;;  %v238_v2 = vadd.s32 56, %v1395_v6  ;;  %vm316_vm0 = vcmp.lt.s32.totalorder %v284_v60, 1000  ;;  %v223_v36 = vld [vmem:[%s1373_s6 + $0xe0] sm:$0xff] }
  0x32   : > { %v396_v3 = vsel %vm300_vm15, %v199_v55, 0.0  ;;  %vm301_vm1 = vcmp.lt.s32.totalorder %v269_v61, 1000  ;;  %v270_v4 = vadd.s32 %v1393_v5, %v237_v63  ;;  %v1081_v7 = vpack.i.bf16 %v395_v43, %v1444_v49 }
  0x33   : > { %v626_v8 = vsel %vm609_vm2, %v396_v3, 0.0  ;;  %vm317_vm3 = vcmp.lt.s32.totalorder %v285_v0, 1000  ;;  %vm1467_vm4 = vmpackc.low %vm301_vm1, %vm300_vm15  ;;  %v1471_v10 = vsel %vm316_vm0, %v215_v50, 0.0  ;;  %v397_v12 = vsel %vm301_vm1, %v200_v57, 0.0  ;;  %v205_v0 = vld [vmem:[%s1373_s6 + $0x50] sm:$0xff] }
  0x34   : > { %1080 = vxpose.xlu0.b32.cont [3/16] (narrow) %v1079_v48, 64  ;;  %v627_v11 = vadd.f32 %v626_v8, %v625_v54  ;;  %vm945_vm5 = vmpackc.low %vm317_vm3, %vm316_vm0  ;;  %v628_v14 = vsel %vm609_vm2, %v397_v12, 0.0  ;;  %v286_v15 = vadd.s32 %v1393_v5, %v253_v1  ;;  %vm302_vm6 = vcmp.lt.s32.totalorder %v270_v4, 1000  ;;  %v220_v48 = vld [vmem:[%s1373_s6 + $0xc8] sm:$0xff] }
  0x35   : > { %946 = vmatprep.subr.msk.bf16.mxu0 %vm945_vm5, %v944_v59  ;;  %982 = vmatprep.subr.msk.bf16.mxu1 %vm945_vm5, %v944_v59  ;;  %v254_v18 = vadd.s32 184, %v1395_v6  ;;  %v271_v19 = vadd.s32 %v1393_v5, %v238_v2  ;;  %v1083_v20 = vpack.i.bf16 %v396_v3, %v1471_v10  ;;  %v1486_v21 = vsel %vm317_vm3, %v216_v52, 0.0 }
  0x36   : > { %v629_v16 = vadd.f32 %v628_v14, %v627_v11  ;;  %949 = vmatpush3.bf16.msk.msra.mxu0 %vm1467_vm4, %v947_v62  ;;  %990 = vmatpush3.bf16.msk.msra.mxu1 %vm1467_vm4, %v947_v62  ;;  %v398_v23 = vsel %vm302_vm6, %v201_v13, 0.0  ;;  %v950_v27 = vpack.c.bf16 %v218_v24, %v217_v22  ;;  %vm318_vm8 = vcmp.lt.s32.totalorder %v286_v15, 1000  ;;  %v206_v14 = vld [vmem:[%s1373_s6 + $0x58] sm:$0xff] }
  0x37   : > { %v630_v25 = vsel %vm609_vm2, %v398_v23, 0.0  ;;  %v287_v26 = vadd.s32 %v1393_v5, %v254_v18  ;;  %vm303_vm7 = vcmp.lt.s32.totalorder %v271_v19, 1000  ;;  %v953_v31 = vpack.c.bf16 %v202_v17, %v201_v13  ;;  %v222_v15 = vld [vmem:[%s1373_s6 + $0xd8] sm:$0xff] }
  0x38   : > { %1082 = vxpose.xlu0.b32.cont [4/16] (narrow) %v1081_v7, 64  ;;  %v631_v28 = vadd.f32 %v630_v25, %v629_v16  ;;  %v1493_v29 = vsel %vm303_vm7, %v202_v17, 0.0  ;;  %v239_v34 = vadd.s32 64, %v1395_v6  ;;  %v255_v35 = vadd.s32 192, %v1395_v6  ;;  %vm1500_vm10 = vmpackc.low %vm303_vm7, %vm302_vm6 }
  0x39   : > { %vm319_vm9 = vcmp.lt.s32.totalorder %v287_v26, 1000  ;;  %v632_v33 = vsel %vm609_vm2, %v1493_v29, 0.0  ;;  %v1085_v37 = vpack.i.bf16 %v397_v12, %v1486_v21  ;;  %v240_v40 = vadd.s32 72, %v1395_v6  ;;  %v221_v12 = vld [vmem:[%s1373_s6 + $0xd0] sm:$0xff] }
  0x3a   : > { %v633_v38 = vadd.f32 %v632_v33, %v631_v28  ;;  %v256_v42 = vadd.s32 200, %v1395_v6  ;;  %vm951_vm11 = vmpackc.low %vm319_vm9, %vm318_vm8  ;;  %v1511_v43 = vsel %vm318_vm8, %v217_v22, 0.0  ;;  %v272_v45 = vadd.s32 %v1393_v5, %v239_v34 }
  0x3b   : > { %v288_v46 = vadd.s32 %v1393_v5, %v255_v35  ;;  %952 = vmatprep.subr.msk.bf16.mxu0 %vm951_vm11, %v950_v27  ;;  %983 = vmatprep.subr.msk.bf16.mxu1 %vm951_vm11, %v950_v27  ;;  %v273_v50 = vadd.s32 %v1393_v5, %v240_v40  ;;  %v956_v52 = vpack.c.bf16 %v220_v48, %v219_v44  ;;  %v241_v54 = vadd.s32 80, %v1395_v6 }
  0x3c   : > { %1084 = vxpose.xlu0.b32.cont [5/16] (narrow) %v1083_v20, 64  ;;  %v289_v51 = vadd.s32 %v1393_v5, %v256_v42  ;;  %v959_v53 = vpack.c.bf16 %v204_v47, %v203_v39  ;;  %955 = vmatpush3.bf16.msk.msra.mxu0 %vm1500_vm10, %v953_v31  ;;  %vm304_vm12 = vcmp.lt.s32.totalorder %v272_v45, 1000  ;;  %v257_v55 = vadd.s32 208, %v1395_v6 }
  0x3d   : > { %vm320_vm13 = vcmp.lt.s32.totalorder %v288_v46, 1000  ;;  %991 = vmatpush3.bf16.msk.msra.mxu1 %vm1500_vm10, %v953_v31  ;;  %v1087_v56 = vpack.i.bf16 %v398_v23, %v1511_v43  ;;  %v1528_v57 = vsel %vm304_vm12, %v203_v39, 0.0  ;;  %vm305_vm14 = vcmp.lt.s32.totalorder %v273_v50, 1000  ;;  %v208_v39 = vld [vmem:[%s1373_s6 + $0x68] sm:$0xff] }
  0x3e   : > { %vm321_vm15 = vcmp.lt.s32.totalorder %v289_v51, 1000  ;;  %v1531_v58 = vsel %vm319_vm9, %v218_v24, 0.0  ;;  %v634_v59 = vsel %vm609_vm2, %v1528_v57, 0.0  ;;  %v1535_v60 = vsel %vm305_vm14, %v204_v47, 0.0  ;;  %vm960_vm1 = vmpackc.low %vm305_vm14, %vm304_vm12 }
  0x3f   : > { %vm957_vm0 = vmpackc.low %vm321_vm15, %vm320_vm13  ;;  %v1538_v61 = vsel %vm320_vm13, %v219_v44, 0.0  ;;  %v635_v62 = vadd.f32 %v634_v59, %v633_v38  ;;  %v636_v63 = vsel %vm609_vm2, %v1535_v60, 0.0  ;;  %v274_v1 = vadd.s32 %v1393_v5, %v241_v54  ;;  %v1587_v38 = vld [vmem:[%s1373_s6 + $0xe8] sm:$0xff]  ;;  %v209_v54 = vld [vmem:[%s1373_s6 + $0x70] sm:$0xff] }
  0x40   : > { %1086 = vxpose.xlu0.b32.cont [6/16] (narrow) %v1085_v37, 64  ;;  %958 = vmatprep.subr.msk.bf16.mxu0 %vm957_vm0, %v956_v52  ;;  %v290_v2 = vadd.s32 %v1393_v5, %v257_v55  ;;  %v242_v3 = vadd.s32 88, %v1395_v6  ;;  %v1089_v4 = vpack.i.bf16 %v1493_v29, %v1531_v58  ;;  %v258_v8 = vadd.s32 216, %v1395_v6  ;;  %v207_v29 = vld [vmem:[%s1373_s6 + $0x60] sm:$0xff] }
  0x41   : > { %984 = vmatprep.subr.msk.bf16.mxu1 %vm957_vm0, %v956_v52  ;;  %961 = vmatpush3.bf16.msk.msra.mxu0 %vm960_vm1, %v959_v53  ;;  %v637_v7 = vadd.f32 %v636_v63, %v635_v62  ;;  %vm306_vm3 = vcmp.lt.s32.totalorder %v274_v1, 1000  ;;  %v1091_v9 = vpack.i.bf16 %v1528_v57, %v1538_v61  ;;  %v1553_v11 = vsel %vm321_vm15, %v220_v48, 0.0  ;;  %v225_v1 = vld [vmem:[%s1373_s6 + $0xf0] sm:$0xff] }
  0x42   : > { %992 = vmatpush3.bf16.msk.msra.mxu1 %vm960_vm1, %v959_v53  ;;  %v1557_v13 = vsel %vm306_vm3, %v205_v0, 0.0  ;;  %v275_v16 = vadd.s32 %v1393_v5, %v242_v3  ;;  %v291_v18 = vadd.s32 %v1393_v5, %v258_v8  ;;  %v962_v19 = vpack.c.bf16 %v222_v15, %v221_v12  ;;  %v210_v3 = vld [vmem:[%s1373_s6 + $0x78] sm:$0xff] }
  0x43   : > { %v638_v17 = vsel %vm609_vm2, %v1557_v13, 0.0  ;;  %v243_v20 = vadd.s32 96, %v1395_v6  ;;  %vm322_vm4 = vcmp.lt.s32.totalorder %v290_v2, 1000  ;;  %v965_v23 = vpack.c.bf16 %v206_v14, %v205_v0 }
  0x44   : > { %1088 = vxpose.xlu0.b32.cont [7/16] (narrow) %v1087_v56, 64  ;;  %v639_v22 = vadd.f32 %v638_v17, %v637_v7  ;;  %vm307_vm5 = vcmp.lt.s32.totalorder %v275_v16, 1000  ;;  %vm323_vm6 = vcmp.lt.s32.totalorder %v291_v18, 1000  ;;  %v259_v25 = vadd.s32 224, %v1395_v6 }
  0x45   : > { %v1566_v24 = vsel %vm307_vm5, %v206_v14, 0.0  ;;  %v276_v26 = vadd.s32 %v1393_v5, %v243_v20  ;;  %vm1571_vm7 = vmpackc.low %vm307_vm5, %vm306_vm3  ;;  %v244_v31 = vadd.s32 104, %v1395_v6  ;;  %v260_v33 = vadd.s32 232, %v1395_v6 }
  0x46   : > { %v640_v28 = vsel %vm609_vm2, %v1566_v24, 0.0  ;;  %vm963_vm8 = vmpackc.low %vm323_vm6, %vm322_vm4  ;;  %v1093_v34 = vpack.i.bf16 %v1535_v60, %v1553_v11  ;;  %v292_v37 = vadd.s32 %v1393_v5, %v259_v25  ;;  %v968_v44 = vpack.c.bf16 %v1587_v38, %v223_v36 }
  0x47   : > { %v641_v35 = vadd.f32 %v640_v28, %v639_v22  ;;  %964 = vmatprep.subr.msk.bf16.mxu0 %vm963_vm8, %v962_v19  ;;  %985 = vmatprep.subr.msk.bf16.mxu1 %vm963_vm8, %v962_v19  ;;  %vm308_vm9 = vcmp.lt.s32.totalorder %v276_v26, 1000  ;;  %v277_v40 = vadd.s32 %v1393_v5, %v244_v31  ;;  %v293_v42 = vadd.s32 %v1393_v5, %v260_v33 }
  0x48   : > { %1090 = vxpose.xlu0.b32.cont [8/16] (narrow) %v1089_v4, 64  ;;  %967 = vmatpush3.bf16.msk.msra.mxu0 %vm1571_vm7, %v965_v23  ;;  %v1598_v45 = vsel %vm322_vm4, %v221_v12, 0.0  ;;  %v404_v46 = vsel %vm308_vm9, %v207_v29, 0.0  ;;  %v971_v47 = vpack.c.bf16 %v208_v39, %v207_v29  ;;  %v245_v48 = vadd.s32 112, %v1395_v6  ;;  %v226_v4 = vld [vmem:[%s1373_s6 + $0xf8] sm:$0xff] }
  0x49   : > { %993 = vmatpush3.bf16.msk.msra.mxu1 %vm1571_vm7, %v965_v23  ;;  %vm324_vm10 = vcmp.lt.s32.totalorder %v292_v37, 1000  ;;  %v642_v50 = vsel %vm609_vm2, %v404_v46, 0.0  ;;  %vm309_vm11 = vcmp.lt.s32.totalorder %v277_v40, 1000  ;;  %vm325_vm12 = vcmp.lt.s32.totalorder %v293_v42, 1000 }
  0x4a   : > { %v643_v51 = vadd.f32 %v642_v50, %v641_v35  ;;  %v405_v52 = vsel %vm309_vm11, %v208_v39, 0.0  ;;  %vm969_vm13 = vmpackc.low %vm325_vm12, %vm324_vm10  ;;  %v261_v55 = vadd.s32 240, %v1395_v6  ;;  %v278_v56 = vadd.s32 %v1393_v5, %v245_v48 }
  0x4b   : > { %v644_v53 = vsel %vm609_vm2, %v405_v52, 0.0  ;;  %970 = vmatprep.subr.msk.bf16.mxu0 %vm969_vm13, %v968_v44  ;;  %vm972_vm14 = vmpackc.low %vm309_vm11, %vm308_vm9  ;;  %986 = vmatprep.subr.msk.bf16.mxu1 %vm969_vm13, %v968_v44  ;;  %v1095_v57 = vpack.i.bf16 %v1557_v13, %v1598_v45  ;;  %v246_v60 = vadd.s32 120, %v1395_v6  ;;  %v1614_v62 = vsel %vm323_vm6, %v222_v15, 0.0 }
  0x4c   : > { %1092 = vxpose.xlu0.b32.cont [9/16] (narrow) %v1091_v9, 64  ;;  %v645_v59 = vadd.f32 %v644_v53, %v643_v51  ;;  %973 = vmatpush3.bf16.msk.msra.mxu0 %vm972_vm14, %v971_v47  ;;  %v294_v63 = vadd.s32 %v1393_v5, %v261_v55  ;;  %vm310_vm15 = vcmp.lt.s32.totalorder %v278_v56, 1000  ;;  %v262_v0 = vadd.s32 248, %v1395_v6 }
  0x4d   : > { %994 = vmatpush3.bf16.msk.msra.mxu1 %vm972_vm14, %v971_v47  ;;  %v406_v2 = vsel %vm310_vm15, %v209_v54, 0.0  ;;  %v279_v7 = vadd.s32 %v1393_v5, %v246_v60  ;;  %v974_v12 = vpack.c.bf16 %v226_v4, %v225_v1  ;;  %v1097_v13 = vpack.i.bf16 %v1566_v24, %v1614_v62 }
  0x4e   : > { %v646_v8 = vsel %vm609_vm2, %v406_v2, 0.0  ;;  %v295_v9 = vadd.s32 %v1393_v5, %v262_v0  ;;  %v977_v6 = vpack.c.bf16 %v210_v3, %v209_v54  ;;  %v420_v15 = vsel %vm324_vm10, %v223_v36, 0.0 }
  0x4f   : > { %v647_v14 = vadd.f32 %v646_v8, %v645_v59  ;;  %vm311_vm0 = vcmp.lt.s32.totalorder %v279_v7, 1000  ;;  %vm326_vm1 = vcmp.lt.s32.totalorder %v294_v63, 1000  ;;  %v650_v17 = vsel %vm609_vm2, %v1418_v30, 0.0 }
  0x50   : > { %1094 = vxpose.xlu0.b32.cont [10/16] (narrow) %v1093_v34, 64  ;;  %vm327_vm3 = vcmp.lt.s32.totalorder %v295_v9, 1000  ;;  %v407_v16 = vsel %vm311_vm0, %v210_v3, 0.0  ;;  %vm978_vm4 = vmpackc.low %vm311_vm0, %vm310_vm15  ;;  %v652_v19 = vsel %vm609_vm2, %v1421_v32, 0.0  ;;  %v1099_v20 = vpack.i.bf16 %v404_v46, %v420_v15 }
  0x51   : > { %v648_v5 = vsel %vm609_vm2, %v407_v16, 0.0  ;;  %vm975_vm5 = vmpackc.low %vm327_vm3, %vm326_vm1  ;;  %v421_v22 = vsel %vm325_vm12, %v1587_v38, 0.0  ;;  %v654_v30 = vsel %vm609_vm2, %v1432_v41, 0.0  ;;  %v656_v25 = vsel %vm609_vm2, %v1444_v49, 0.0 }
  0x52   : > { %v649_v18 = vadd.f32 %v648_v5, %v647_v14  ;;  %976 = vmatprep.subr.msk.bf16.mxu0 %vm975_vm5, %v974_v12  ;;  %987 = vmatprep.subr.msk.bf16.mxu1 %vm975_vm5, %v974_v12  ;;  %v1101_v26 = vpack.i.bf16 %v405_v52, %v421_v22  ;;  %v422_v27 = vsel %vm326_vm1, %v225_v1, 0.0  ;;  %v658_v28 = vsel %vm609_vm2, %v1471_v10, 0.0 }
  0x53   : > { %979 = vmatpush3.bf16.msk.msra.mxu0 %vm978_vm4, %v977_v6  ;;  %995 = vmatpush3.bf16.msk.msra.mxu1 %vm978_vm4, %v977_v6  ;;  %v660_v31 = vsel %vm609_vm2, %v1486_v21, 0.0  ;;  %v1103_v33 = vpack.i.bf16 %v406_v2, %v422_v27  ;;  %v423_v41 = vsel %vm327_vm3, %v226_v4, 0.0  ;;  %v662_v49 = vsel %vm609_vm2, %v1511_v43, 0.0 }
  0x54   : > { %1096 = vxpose.xlu0.b32.cont [11/16] (narrow) %v1095_v57, 64  ;;  %v651_v23 = vadd.f32 %v650_v17, %v649_v18  ;;  %v664_v36 = vsel %vm609_vm2, %v1531_v58, 0.0  ;;  %v1105_v37 = vpack.i.bf16 %v407_v16, %v423_v41  ;;  %v666_v10 = vsel %vm609_vm2, %v1538_v61, 0.0 }
  0x55   : > { %v668_v21 = vsel %vm609_vm2, %v1553_v11, 0.0  ;;  %v670_v42 = vsel %vm609_vm2, %v1598_v45, 0.0  ;;  %v672_v44 = vsel %vm609_vm2, %v1614_v62, 0.0  ;;  %v674_v46 = vsel %vm609_vm2, %v420_v15, 0.0 }
  0x56   : > { %v653_v24 = vadd.f32 %v652_v19, %v651_v23  ;;  %v676_v48 = vsel %vm609_vm2, %v421_v22, 0.0  ;;  %v678_v50 = vsel %vm609_vm2, %v422_v27, 0.0  ;;  %v680_v11 = vsel %vm609_vm2, %v423_v41, 0.0 }
  0x57   : > { %vm689_vm6 = vcmask 516096  }
  0x58   : > { %1098 = vxpose.xlu0.b32.cont [12/16] (narrow) %v1097_v13, 64  ;;  %v655_v32 = vadd.f32 %v654_v30, %v653_v24  ;;  %v618_v30 = vld [vmem:[%s1378_s8] sm:$0x1] }
  0x5a   : > { %v657_v29 = vadd.f32 %v656_v25, %v655_v32 }
  0x5c   : > { %1100 = vxpose.xlu0.b32.cont [13/16] (narrow) %v1099_v20, 64  ;;  %v659_v34 = vadd.f32 %v658_v28, %v657_v29 }
  0x5e   : > { %v661_v35 = vadd.f32 %v660_v31, %v659_v34 }
  0x60   : > { %1102 = vxpose.xlu0.b32.cont [14/16] (narrow) %v1101_v26, 64  ;;  %v663_v38 = vadd.f32 %v662_v49, %v661_v35 }
  0x62   : > { %v665_v39 = vadd.f32 %v664_v36, %v663_v38 }
  0x64   : > { %1104 = vxpose.xlu0.b32.cont [15/16] (narrow) %v1103_v33, 64  ;;  %v667_v40 = vadd.f32 %v666_v10, %v665_v39 }
  0x66   : > { %v669_v43 = vadd.f32 %v668_v21, %v667_v40 }
  0x68   : > { %1106 = vxpose.xlu0.b32.end [16/16] (narrow) %v1105_v37, 64  ;;  %v671_v58 = vadd.f32 %v670_v42, %v669_v43 }
  0x6a   : > { %v673_v47 = vadd.f32 %v672_v44, %v671_v58 }
  0x6c   : > { %v675_v61 = vadd.f32 %v674_v46, %v673_v47 }
  0x6e   : > { %v677_v51 = vadd.f32 %v676_v48, %v675_v61 }
  0x70   : > { %v679_v52 = vadd.f32 %v678_v50, %v677_v51 }
  0x72   : > { %v681_v53 = vadd.f32 %v680_v11, %v679_v52 }
  0x74   : > { %v682_v5 = vrot.slane %v681_v53, 4 }
  0x76   : > { %v683_v18 = vadd.f32 %v682_v5, %v681_v53 }
  0x78   : > { %v684_v19 = vrot.slane %v683_v18, 2 }
  0x7a   : > { %v685_v20 = vadd.f32 %v684_v19, %v683_v18 }
  0x7c   : > { %v686_v22 = vrot.slane %v685_v20, 1 }
  0x7e   : > { %v687_v23 = vadd.f32 %v686_v22, %v685_v20 }
  0x80   : > { %v688_v24 = vadd.f32 %v687_v23, %v618_v30 }
  0x82   : > { %690 = vst.msk [vmem:[%s1378_s8] sm:$0x1] %vm689_vm6, %v688_v24 }
  0xac   : > { %v1107_v54 = vpop.trf.xlu0 }
  0xad   : > { %v1108_v45 = vunpack.i.l.bf16 %v1107_v54  ;;  %v1111_v55 = vunpack.i.h.bf16 %v1107_v54 }
  0xaf   : > { %552 = vmatprep.mubr.f32.mxu0 %v1108_v45 }
  0xb0   : > { %v1112_v56 = vpop.trf.xlu0  ;;  %553 = vmatmul.mubr.f32.vlgmr.msra.gmra.mrb[0].mxu0 %v1111_v55 }
  0xb1   : > { %v1113_v57 = vunpack.i.l.bf16 %v1112_v56  ;;  %v1116_v59 = vunpack.i.h.bf16 %v1112_v56 }
  0xb3   : > { %557 = vmatprep.mubr.f32.mxu0 %v1113_v57 }
  0xb4   : > { %v1117_v60 = vpop.trf.xlu0  ;;  %558 = vmatmul.mubr.f32.gmra.mrb[2].mxu0 %v1116_v59 }
  0xb5   : > { %v1118_v62 = vunpack.i.l.bf16 %v1117_v60  ;;  %v1121_v63 = vunpack.i.h.bf16 %v1117_v60 }
  0xb7   : > { %562 = vmatprep.mubr.f32.mxu0 %v1118_v62 }
  0xb8   : > { %v1122_v0 = vpop.trf.xlu0  ;;  %563 = vmatmul.mubr.f32.gmra.mrb[4].mxu0 %v1121_v63 }
  0xb9   : > { %v1123_v1 = vunpack.i.l.bf16 %v1122_v0  ;;  %v1126_v2 = vunpack.i.h.bf16 %v1122_v0 }
  0xbb   : > { %567 = vmatprep.mubr.f32.mxu0 %v1123_v1 }
  0xbc   : > { %v1127_v3 = vpop.trf.xlu0  ;;  %568 = vmatmul.mubr.f32.gmra.mrb[6].mxu0 %v1126_v2 }
  0xbd   : > { %v1128_v4 = vunpack.i.l.bf16 %v1127_v3  ;;  %v1131_v7 = vunpack.i.h.bf16 %v1127_v3 }
  0xbf   : > { %572 = vmatprep.mubr.f32.mxu1 %v1128_v4 }
  0xc0   : > { %v1132_v8 = vpop.trf.xlu0  ;;  %573 = vmatmul.mubr.f32.vlgmr.msra.gmra.mrb[0].mxu1 %v1131_v7 }
  0xc1   : > { %v1133_v9 = vunpack.i.l.bf16 %v1132_v8  ;;  %v1136_v12 = vunpack.i.h.bf16 %v1132_v8 }
  0xc3   : > { %577 = vmatprep.mubr.f32.mxu1 %v1133_v9 }
  0xc4   : > { %v1137_v13 = vpop.trf.xlu0  ;;  %578 = vmatmul.mubr.f32.gmra.mrb[2].mxu1 %v1136_v12 }
  0xc5   : > { %v1138_v14 = vunpack.i.l.bf16 %v1137_v13  ;;  %v1141_v6 = vunpack.i.h.bf16 %v1137_v13 }
  0xc7   : > { %582 = vmatprep.mubr.f32.mxu1 %v1138_v14 }
  0xc8   : > { %v1142_v15 = vpop.trf.xlu0  ;;  %583 = vmatmul.mubr.f32.gmra.mrb[4].mxu1 %v1141_v6 }
  0xc9   : > { %v1146_v16 = vunpack.i.h.bf16 %v1142_v15  ;;  %v1143_v17 = vunpack.i.l.bf16 %v1142_v15 }
  0xcb   : > { %587 = vmatprep.mubr.f32.mxu1 %v1143_v17 }
  0xcc   : > { %588 = vmatmul.mubr.f32.gmra.mrb[6].mxu1 %v1146_v16 }
  0xcd   : > { %1160 = shalt.err (!%p1157_p7)
}
  0xce   : > { %s1161_s5 = scalar_lea.hbm %s1671_s27, 16  ;;  %s1165_s12 = scalar_lea.hbm %s1778_s2, 32 }
  0xcf   : > { %p1162_p8 = scmp.ne.s32.totalorder %s1671_s27, %s1161_s5  ;;  %p1166_p12 = scmp.lt.u32.totalorder %s1671_s27, %s1778_s2 }
  0xd0   : > { %p1167_p13 = scmp.lt.u32.totalorder %s1165_s12, %s1161_s5  ;;  %p1169_p1 = scmp.lt.u32.totalorder %s1161_s5, %s1671_s27 }
  0xd1   : > { %p1163_p10 = pnand %p1162_p8, %p1344_p3 }
  0xd2   : > { %p1168_p0 = por %p1167_p13, %p1166_p12 }
  0xd3   : > { %p1164_p11 = pneg %p1163_p10 }
  0xd4   : > { %p1170_p2 = por %p1169_p1, %p1168_p0 }
  0xd6   : > { %p1171_p4 = pnand %p1170_p2, %p1164_p11 }
  0xd8   : > { %1174 = shalt.err (!%p1171_p4)
}
  0xd9   : > { %997 = dma.vmem_to_hbm [thread:$0]  (%p1344_p3), %s726_s18, 16, %s1671_s27, %s697_s28   ;;  %v593_v27 = vld [vmem:[%s1375_s7] sm:$0xff]  ;;  %v594_v33 = vld [vmem:[%s1375_s7 + $0x8] sm:$0xff]  ;;  %v595_v36 = vld [vmem:[%s1375_s7 + $0x10] sm:$0xff] }
  0xda   : > { %v596_v21 = vld [vmem:[%s1375_s7 + $0x18] sm:$0xff]  ;;  %v597_v58 = vld [vmem:[%s1375_s7 + $0x20] sm:$0xff]  ;;  %v598_v50 = vld [vmem:[%s1375_s7 + $0x28] sm:$0xff]  ;;  %s875_s18 = sshll.u32 %s1261_s13, 10  ;;  %s709_s24 = sshll.u32 %s1375_s7, 4  ;;  %s1720_s24 = int_to_ptr.vmem [resolvable:$true] %s709_s24 }
  0xdb   : > { %v599_v54 = vld [vmem:[%s1375_s7 + $0x30] sm:$0xff]  ;;  %v600_v59 = vld [vmem:[%s1375_s7 + $0x38] sm:$0xff]  ;;  %s1718_s29 = scalar_lea.hbm %s1777_s1, %s875_s18  ;;  %s692_s13 = scalar_lea.sflag [#allocation3], %s1365_s26 }
  0xdc   : > { %s1175_s30 = scalar_lea.vmem %s1720_s24, 1024  ;;  %s1277_s3 = smov [#allocation2]  }
  0xdd   : > { %p1176_p5 = scmp.ne.s32.totalorder %s1720_s24, %s1175_s30  ;;  %s1179_s4 = sshll.u32 %s1277_s3, 4  ;;  %s1180_s4 = int_to_ptr.vmem [resolvable:$false] %s1179_s4 }
  0xde   : > { %s1181_s5 = scalar_lea.vmem %s1180_s4, 2048  ;;  %p1182_p8 = scmp.lt.s32.totalorder %s1720_s24, %s1180_s4 }
  0xdf   : > { %p1177_p6 = pnand %p1176_p5, %p1344_p3  ;;  %p1183_p10 = scmp.lt.s32.totalorder %s1181_s5, %s1175_s30 }
  0xe1   : > { %p1178_p7 = pneg %p1177_p6  ;;  %p1184_p11 = por %p1183_p10, %p1182_p8 }
  0xe3   : > { %p1185_p12 = pnand %p1184_p11, %p1178_p7 }
 0x183   : > { %v908_v25 = vpop.f32.mrb[0].mxu0 }
 0x184   : > { %v909_v26 = vpop.f32.mrb[1].mxu0 }
 0x185   : > { %v910_v32 = vadd.f32 %v909_v26, %v908_v25 }
 0x187   : > { %v601_v28 = vadd.f32 %v910_v32, %v593_v27  ;;  %v911_v29 = vpop.f32.mrb[2].mxu0 }
 0x188   : > { %v912_v31 = vpop.f32.mrb[3].mxu0 }
 0x189   : > { %610 = vst.msk [vmem:[%s1375_s7] sm:$0xff] %vm609_vm2, %v601_v28  ;;  %v913_v41 = vadd.f32 %v912_v31, %v911_v29 }
 0x18b   : > { %v602_v34 = vadd.f32 %v913_v41, %v594_v33  ;;  %v914_v49 = vpop.f32.mrb[4].mxu0 }
 0x18c   : > { %v915_v35 = vpop.f32.mrb[5].mxu0 }
 0x18d   : > { %611 = vst.msk [vmem:[%s1375_s7 + $0x8] sm:$0xff] %vm609_vm2, %v602_v34  ;;  %v916_v37 = vadd.f32 %v915_v35, %v914_v49 }
 0x18f   : > { %v603_v38 = vadd.f32 %v916_v37, %v595_v36  ;;  %v917_v10 = vpop.f32.mrb[6].mxu0 }
 0x190   : > { %v918_v39 = vpop.f32.mrb[7].mxu0 }
 0x191   : > { %612 = vst.msk [vmem:[%s1375_s7 + $0x10] sm:$0xff] %vm609_vm2, %v603_v38  ;;  %v919_v40 = vadd.f32 %v918_v39, %v917_v10 }
 0x193   : > { %v604_v42 = vadd.f32 %v919_v40, %v596_v21  ;;  %v920_v43 = vpop.f32.mrb[0].mxu1 }
 0x194   : > { %v921_v44 = vpop.f32.mrb[1].mxu1 }
 0x195   : > { %613 = vst.msk [vmem:[%s1375_s7 + $0x18] sm:$0xff] %vm609_vm2, %v604_v42  ;;  %v922_v46 = vadd.f32 %v921_v44, %v920_v43 }
 0x197   : > { %v605_v47 = vadd.f32 %v922_v46, %v597_v58  ;;  %v923_v48 = vpop.f32.mrb[2].mxu1 }
 0x198   : > { %v924_v61 = vpop.f32.mrb[3].mxu1 }
 0x199   : > { %614 = vst.msk [vmem:[%s1375_s7 + $0x20] sm:$0xff] %vm609_vm2, %v605_v47  ;;  %v925_v51 = vadd.f32 %v924_v61, %v923_v48 }
 0x19b   : > { %v606_v11 = vadd.f32 %v925_v51, %v598_v50  ;;  %v926_v52 = vpop.f32.mrb[4].mxu1 }
 0x19c   : > { %v927_v53 = vpop.f32.mrb[5].mxu1 }
 0x19d   : > { %615 = vst.msk [vmem:[%s1375_s7 + $0x28] sm:$0xff] %vm609_vm2, %v606_v11  ;;  %v928_v45 = vadd.f32 %v927_v53, %v926_v52 }
 0x19f   : > { %v607_v55 = vadd.f32 %v928_v45, %v599_v54  ;;  %v929_v56 = vpop.f32.mrb[6].mxu1 }
 0x1a0   : > { %v930_v57 = vpop.f32.mrb[7].mxu1 }
 0x1a1   : > { %616 = vst.msk [vmem:[%s1375_s7 + $0x30] sm:$0xff] %vm609_vm2, %v607_v55  ;;  %v931_v60 = vadd.f32 %v930_v57, %v929_v56 }
 0x1a3   : > { %v608_v62 = vadd.f32 %v931_v60, %v600_v59 }
 0x1a5   : > { %617 = vst.msk [vmem:[%s1375_s7 + $0x38] sm:$0xff] %vm609_vm2, %v608_v62 }
 0x1a6   : > { %1188 = shalt.err (!%p1185_p12)
}
 0x1a7   : > { %s1189_s7 = scalar_lea.hbm %s1718_s29, 1024  ;;  %s1193_s12 = scalar_lea.hbm %s1777_s1, 2048 }
 0x1a8   : > { %p1190_p13 = scmp.ne.s32.totalorder %s1718_s29, %s1189_s7  ;;  %p1194_p2 = scmp.lt.u32.totalorder %s1718_s29, %s1777_s1 }
 0x1a9   : > { %p1195_p4 = scmp.lt.u32.totalorder %s1193_s12, %s1189_s7  ;;  %p1197_p6 = scmp.lt.u32.totalorder %s1189_s7, %s1718_s29 }
 0x1aa   : > { %p1191_p0 = pnand %p1190_p13, %p1344_p3 }
 0x1ab   : > { %p1196_p5 = por %p1195_p4, %p1194_p2 }
 0x1ac   : > { %p1192_p1 = pneg %p1191_p0 }
 0x1ad   : > { %p1198_p7 = por %p1197_p6, %p1196_p5 }
 0x1af   : > { %p1199_p8 = pnand %p1198_p7, %p1192_p1 }
 0x1b1   : > { %1202 = shalt.err (!%p1199_p8)
}
 0x1b2   : > { %s1278_s18 = smov 128   ;;  %s1279_s27 = smov 8  }
 0x1b3   : > { %996 = dma.vmem_to_hbm [thread:$0]  (%p1344_p3), %s1720_s24, 1024, %s1718_s29, %s692_s13, %s1278_s18, %s1278_s18, %s1279_s27  }
 0x1b4 PF: > { %p1007_p10 = scmp.ge.s32.totalorder %s1273_s16, 2  ;;  %s737_s28 = sand.u32 1, %s1245_s9  }
 0x1b5   : > { %s738_s30 = scalar_lea.sflag [#allocation3], %s737_s28 }
 0x1b6   : > { %p1001_p11 = pnand %p1007_p10, %p1354_p9 }
 0x1b8   : > { %1236 = dma.done.wait (!%p1001_p11), %s738_s30, 1024  }
 0x1b9   : > { %1238 = vsyncadd (!%p1001_p11), %s738_s30, 4294966272  ;;  %s747_s3 = scalar_lea.sflag [#allocation5], %s737_s28 }
 0x1ba   : > { %1240 = dma.done.wait (!%p1001_p11), %s747_s3, 16  }
 0x1bb   : > { %1242 = vsyncadd (!%p1001_p11), %s747_s3, 4294967280  ;;  %s19_s16 = sadd.s32 1, %s1273_s16   ;;  %s1789_s9 = smov %s1249_s10 }
 0x1bc   : > { %p16_p12 = scmp.ge.s32.totalorder %s19_s16, 6   ;;  %s1790_s10 = smov %s1253_s11 }
 0x1bd   : > { %s1791_s11 = smov %s1362_s25  ;;  %s1792_s12 = smov %s1265_s14 }
 0x1be   : > { %s1793_s13 = smov %s1269_s15  ;;  %s1794_s14 = smov %s1797_s19 }
 0x1bf   : > { %s1795_s15 = smov %s1801_s20  ;;  %18 = sbr.rel (!%p16_p12) target bundleno = 7 (0x7), region = 80 }
 0x1c6   :  { %751 = vsyncpa [#allocation3], 1 }
 0x1c7   :  { %753 = vsyncpa [#allocation3 + $0x1], 1 }
 0x1c8   :  { %754 = vsyncpa [#allocation5], 1 }
 0x1c9   :  { %756 = vsyncpa [#allocation5 + $0x1], 1 }

</bundles_post_ra>
